<compile_context>
chip_gen: v6e
topology: v6e:2x2x1
jax: 0.10.0
libtpu: 0.0.40
codegen_flags: <defaults>
</compile_context>

<pallas_src>
import jax
import jax.numpy as jnp
from jax import lax
from jax.experimental import pallas as pl
from jax.experimental.pallas import tpu as pltpu


def _round_up(x, m):
    return ((x + m - 1) // m) * m


def _make_mlp_kernel(n_hidden):
    """Fused kernel: n_hidden x (Linear -> ReLU) followed by a final Linear."""

    def kernel(*refs):
        # refs = (x_ref, w0, b0, w1, b1, ..., w_final, b_final, o_ref)
        x_ref = refs[0]
        o_ref = refs[-1]
        params = refs[1:-1]

        h = x_ref[...]                                  # (tm, K) bf16
        for l in range(n_hidden):
            w = params[2 * l][...]                      # (in, out) bf16
            b = params[2 * l + 1][...]                  # (1, out)  f32
            a = jnp.dot(h, w, preferred_element_type=jnp.float32) + b  # f32
            a = jnp.maximum(a, 0.0)                     # ReLU in f32 (VPU)
            h = a.astype(jnp.bfloat16)                  # bf16 back into the MXU
            # TODO(synk): training-mode nn.Dropout would need pltpu.prng_seed /
            # pltpu.prng_random_bits with inverted scaling; eval mode (and the
            # module default dropout_prob=None) is the identity, so omitted.

        wf = params[2 * n_hidden][...]                  # (in, out_len) bf16
        bf = params[2 * n_hidden + 1][...]              # (out_len, 1)  f32
        # Lane-dense final layer: contract wf axis 0 with h axis 1 so the
        # result is (out_len, tm) -> dense stores even for out_len = 1.
        out = lax.dot_general(
            wf, h,
            dimension_numbers=(((0,), (1,)), ((), ())),
            preferred_element_type=jnp.float32,
        ) + bf
        o_ref[...] = out.astype(o_ref.dtype)

    return kernel


def _pick_batch_tile(m_rows, target):
    """Batch tile: big enough to amortize per-step overhead, small enough to
    keep >=4 parallel grid steps for v7x megacore when the batch allows it."""
    if m_rows <= 256:
        # Tiny batch: one grid step over the whole (sublane-padded) batch.
        return _round_up(m_rows, 8)
    tm = 512
    for cand in (4096, 2048, 1024, 512):
        if cand > target:
            continue
        tm = cand
        if pl.cdiv(m_rows, cand) >= 4:
            break
    # Never use a tile wider than the (128-aligned) batch itself.
    return min(tm, _round_up(m_rows, 128))


def error_comp_forward(x, hidden_params, final_params, *, tm_target=2048):
    """Pallas equivalent of ErrorCompModel.forward (eval mode).

    x:             (batch, input_len) float array.
    hidden_params: list of (w, b), w: (in, out), b: (1, out)  [PyTorch weights
                   transposed so the kernel computes h @ w + b].
    final_params:  (w, b) for the final Linear, same layout.
    Returns (batch, output_len) float32.
    """
    M, K = x.shape
    n_hidden = len(hidden_params)
    out_len = final_params[0].shape[1]

    # --- batch tiling (handles M not divisible by the tile via zero padding) ---
    tm = _pick_batch_tile(M, tm_target)
    grid_m = pl.cdiv(M, tm)
    m_final = grid_m * tm
    if m_final != M:
        x = jnp.pad(x, ((0, m_final - M), (0, 0)))

    # --- operand preparation: bf16 into the MXU, f32 biases on the VPU ---
    x_bf16 = x.astype(jnp.bfloat16)
    flat_params = []
    for w, b in hidden_params:
        flat_params += [w.astype(jnp.bfloat16), b.astype(jnp.float32)]
    wf, bf = final_params
    flat_params += [wf.astype(jnp.bfloat16),
                    bf.astype(jnp.float32).reshape(out_len, 1)]

    # All weights/biases are fully VMEM-resident (constant index map). Guard the
    # assumption so scaling hid_units never silently blows VMEM (v7x: 64 MiB/TC).
    param_bytes = sum(int(p.size) * p.dtype.itemsize for p in flat_params)
    if 2 * param_bytes > (16 << 20):
        # TODO(synk): switch to a K-tiled grid with a VMEM accumulator (P3)
        # once parameters no longer trivially fit VMEM.
        raise NotImplementedError("parameters too large for fully-resident VMEM scheme")

    # VMEM footprint estimate (double-buffered x/out tiles, resident params,
    # live f32 activation temporaries) with 2x headroom, capped for v7x.
    max_width = max([K, out_len] + [w.shape[1] for w, _ in hidden_params])
    est = (2 * tm * K * 2                # x tiles (bf16, double-buffered)
           + 2 * out_len * tm * 4        # output tiles (f32, double-buffered)
           + 2 * param_bytes             # resident params
           + 4 * tm * max_width * 4)     # activation temporaries (f32)
    vmem_limit = int(min(48 << 20, max(2 * est, 16 << 20)))

    in_specs = [pl.BlockSpec((tm, K), lambda i: (i, 0))]
    for p in flat_params:
        in_specs.append(pl.BlockSpec(p.shape, lambda i: (0, 0)))

    out_t = pl.pallas_call(
        _make_mlp_kernel(n_hidden),
        out_shape=jax.ShapeDtypeStruct((out_len, m_final), jnp.float32),
        grid_spec=pltpu.PrefetchScalarGridSpec(
            num_scalar_prefetch=0,
            grid=(grid_m,),
            in_specs=in_specs,
            out_specs=pl.BlockSpec((out_len, tm), lambda i: (0, i)),
        ),
        compiler_params=pltpu.CompilerParams(
            dimension_semantics=("parallel",),   # batch tiles shard across v7x TCs
            vmem_limit_bytes=vmem_limit,
        ),
    )(x_bf16, *flat_params)

    # Wrapper-side layout plumbing back to the module's (batch, out_len) shape.
    return out_t[:, :M].T


def _reference_mirror(x, hidden_params, final_params):
    """Pure-JAX reference with the same bf16-operand / f32-accumulate math."""
    h = x.astype(jnp.bfloat16)
    for w, b in hidden_params:
        a = jnp.dot(h, w.astype(jnp.bfloat16),
                    preferred_element_type=jnp.float32) + b.astype(jnp.float32)
        h = jnp.maximum(a, 0.0).astype(jnp.bfloat16)
    wf, bf = final_params
    return (jnp.dot(h, wf.astype(jnp.bfloat16),
                    preferred_element_type=jnp.float32)
            + bf.astype(jnp.float32))


def _reference_f32(x, hidden_params, final_params):
    h = x
    for w, b in hidden_params:
        h = jnp.maximum(h @ w + b, 0.0)
    wf, bf = final_params
    return h @ wf + bf


if __name__ == "__main__":
    # Shapes implied by the module: ErrorCompModel(input_len=32,
    # hid_units="64_64", output_len=1) applied to small batches.
    input_len, output_len = 32, 1
    hid_units = "64_64"
    hidden_sizes = [int(u) for u in hid_units.split("_")]

    key = jax.random.PRNGKey(0)
    keys = jax.random.split(key, 2 * (len(hidden_sizes) + 1) + 2)

    # Deterministic params. PyTorch stores weight as (out, in); we keep (in, out)
    # so the kernel computes h @ w + b (identical math).
    hidden_params = []
    in_len = input_len
    ki = 2
    for out_w in hidden_sizes:
        w = jax.random.normal(keys[ki], (in_len, out_w), dtype=jnp.float32) * 0.05
        b = jax.random.normal(keys[ki + 1], (1, out_w), dtype=jnp.float32) * 0.05
        hidden_params.append((w, b))
        in_len = out_w
        ki += 2
    wf = jax.random.normal(keys[ki], (in_len, output_len), dtype=jnp.float32) * 0.05
    bf = jax.random.normal(keys[ki + 1], (1, output_len), dtype=jnp.float32) * 0.05
    final_params = (wf, bf)

    # Case 1: tiny batch (single grid step).
    # Case 2: batch not divisible by the tile (exercises padding + multi-step grid).
    for batch in (8, 520):
        x = jax.random.normal(keys[0], (batch, input_len), dtype=jnp.float32)
        out = jax.block_until_ready(error_comp_forward(x, hidden_params, final_params))
        assert out.shape == (batch, output_len)

        ref_bf16 = _reference_mirror(x, hidden_params, final_params)
        ref_f32 = _reference_f32(x, hidden_params, final_params)
        # Tight vs the same-math reference, loose vs the full-f32 reference
        # (bf16 MXU operands are the intended numerics).
        assert jnp.allclose(out, ref_bf16, atol=2e-3, rtol=2e-3), \
            f"mismatch vs bf16 mirror reference (batch={batch})"
        assert jnp.allclose(out, ref_f32, atol=5e-2, rtol=5e-2), \
            f"mismatch vs f32 reference (batch={batch})"

    print("KERNEL_OK")
</pallas_src>

<mosaic_0001>
module attributes {stable_mosaic.version = 11 : i64} {
  func.func @kernel(%arg0: i32, %arg1: memref<8x32xbf16, #tpu.memory_space<vmem>>, %arg2: memref<32x64xbf16, #tpu.memory_space<vmem>>, %arg3: memref<1x64xf32, #tpu.memory_space<vmem>>, %arg4: memref<64x64xbf16, #tpu.memory_space<vmem>>, %arg5: memref<1x64xf32, #tpu.memory_space<vmem>>, %arg6: memref<64x1xbf16, #tpu.memory_space<vmem>>, %arg7: memref<1x1xf32, #tpu.memory_space<vmem>>, %arg8: memref<1x8xf32, #tpu.memory_space<vmem>>) attributes {dimension_semantics = [#tpu.dimension_semantics<parallel>], iteration_bounds = array<i64: 1>, scalar_prefetch = 0 : i64, scratch_operands = 0 : i64, tpu.core_type = #tpu.core_type<tc>, window_params = [{transform_indices = @transform_0, window_bounds = array<i64: 8, 32>}, {pipeline_mode = #tpu.pipeline_mode<synchronous>, transform_indices = @transform_1, window_bounds = array<i64: 32, 64>}, {pipeline_mode = #tpu.pipeline_mode<synchronous>, transform_indices = @transform_2, window_bounds = array<i64: 1, 64>}, {pipeline_mode = #tpu.pipeline_mode<synchronous>, transform_indices = @transform_3, window_bounds = array<i64: 64, 64>}, {pipeline_mode = #tpu.pipeline_mode<synchronous>, transform_indices = @transform_4, window_bounds = array<i64: 1, 64>}, {pipeline_mode = #tpu.pipeline_mode<synchronous>, transform_indices = @transform_5, window_bounds = array<i64: 64, 1>}, {pipeline_mode = #tpu.pipeline_mode<synchronous>, transform_indices = @transform_6, window_bounds = array<i64: 1, 1>}, {transform_indices = @transform_7, window_bounds = array<i64: 1, 8>}]} {
    %c0 = arith.constant 0 : index
    %c0_0 = arith.constant 0 : index
    %0 = vector.load %arg1[%c0, %c0_0] : memref<8x32xbf16, #tpu.memory_space<vmem>>, vector<8x32xbf16>
    %c0_1 = arith.constant 0 : index
    %c0_2 = arith.constant 0 : index
    %1 = vector.load %arg2[%c0_1, %c0_2] : memref<32x64xbf16, #tpu.memory_space<vmem>>, vector<32x64xbf16>
    %c0_3 = arith.constant 0 : index
    %c0_4 = arith.constant 0 : index
    %2 = vector.load %arg3[%c0_3, %c0_4] : memref<1x64xf32, #tpu.memory_space<vmem>>, vector<1x64xf32>
    %cst = arith.constant dense<0.000000e+00> : vector<8x64xf32>
    %3 = tpu.matmul %0, %1, %cst {dimension_numbers = #tpu.dot_dimension_numbers<[1], [0], [0], [1], [0, 0, 1, 1], [], []>} : vector<8x32xbf16>, vector<32x64xbf16>, vector<8x64xf32> -> vector<8x64xf32>
    %4 = vector.broadcast %2 : vector<1x64xf32> to vector<8x64xf32>
    %5 = arith.addf %3, %4 : vector<8x64xf32>
    %cst_5 = arith.constant 0.000000e+00 : f32
    %6 = vector.broadcast %cst_5 : f32 to vector<8x64xf32>
    %7 = arith.maximumf %5, %6 : vector<8x64xf32>
    %8 = arith.truncf %7 : vector<8x64xf32> to vector<8x64xbf16>
    %c0_6 = arith.constant 0 : index
    %c0_7 = arith.constant 0 : index
    %9 = vector.load %arg4[%c0_6, %c0_7] : memref<64x64xbf16, #tpu.memory_space<vmem>>, vector<64x64xbf16>
    %c0_8 = arith.constant 0 : index
    %c0_9 = arith.constant 0 : index
    %10 = vector.load %arg5[%c0_8, %c0_9] : memref<1x64xf32, #tpu.memory_space<vmem>>, vector<1x64xf32>
    %cst_10 = arith.constant dense<0.000000e+00> : vector<8x64xf32>
    %11 = tpu.matmul %8, %9, %cst_10 {dimension_numbers = #tpu.dot_dimension_numbers<[1], [0], [0], [1], [0, 0, 1, 1], [], []>} : vector<8x64xbf16>, vector<64x64xbf16>, vector<8x64xf32> -> vector<8x64xf32>
    %12 = vector.broadcast %10 : vector<1x64xf32> to vector<8x64xf32>
    %13 = arith.addf %11, %12 : vector<8x64xf32>
    %cst_11 = arith.constant 0.000000e+00 : f32
    %14 = vector.broadcast %cst_11 : f32 to vector<8x64xf32>
    %15 = arith.maximumf %13, %14 : vector<8x64xf32>
    %16 = arith.truncf %15 : vector<8x64xf32> to vector<8x64xbf16>
    %c0_12 = arith.constant 0 : index
    %c0_13 = arith.constant 0 : index
    %17 = vector.load %arg6[%c0_12, %c0_13] : memref<64x1xbf16, #tpu.memory_space<vmem>>, vector<64x1xbf16>
    %c0_14 = arith.constant 0 : index
    %c0_15 = arith.constant 0 : index
    %18 = vector.load %arg7[%c0_14, %c0_15] : memref<1x1xf32, #tpu.memory_space<vmem>>, vector<1x1xf32>
    %cst_16 = arith.constant dense<0.000000e+00> : vector<1x8xf32>
    %19 = tpu.matmul %17, %16, %cst_16 {dimension_numbers = #tpu.dot_dimension_numbers<[0], [1], [1], [0], [0, 1, 1, 0], [], []>} : vector<64x1xbf16>, vector<8x64xbf16>, vector<1x8xf32> -> vector<1x8xf32>
    %20 = vector.broadcast %18 : vector<1x1xf32> to vector<1x8xf32>
    %21 = arith.addf %19, %20 : vector<1x8xf32>
    %c0_17 = arith.constant 0 : index
    %c0_18 = arith.constant 0 : index
    %22 = vector.load %arg8[%c0_17, %c0_18] : memref<1x8xf32, #tpu.memory_space<vmem>>, vector<1x8xf32>
    tpu.vector_store %arg8[%c0_17, %c0_18], %21 {strides = array<i32>} : memref<1x8xf32, #tpu.memory_space<vmem>>, vector<1x8xf32>,
    return
  }
  func.func @transform_0(%arg0: i32) -> (i32, i32) {
    %c0_i32 = arith.constant 0 : i32
    %c0_i32_0 = arith.constant 0 : i32
    return %arg0, %c0_i32 : i32, i32
  }
  func.func @transform_1(%arg0: i32) -> (i32, i32) {
    %c0_i32 = arith.constant 0 : i32
    %c0_i32_0 = arith.constant 0 : i32
    %c0_i32_1 = arith.constant 0 : i32
    return %c0_i32, %c0_i32_0 : i32, i32
  }
  func.func @transform_2(%arg0: i32) -> (i32, i32) {
    %c0_i32 = arith.constant 0 : i32
    %c0_i32_0 = arith.constant 0 : i32
    %c0_i32_1 = arith.constant 0 : i32
    return %c0_i32, %c0_i32_0 : i32, i32
  }
  func.func @transform_3(%arg0: i32) -> (i32, i32) {
    %c0_i32 = arith.constant 0 : i32
    %c0_i32_0 = arith.constant 0 : i32
    %c0_i32_1 = arith.constant 0 : i32
    return %c0_i32, %c0_i32_0 : i32, i32
  }
  func.func @transform_4(%arg0: i32) -> (i32, i32) {
    %c0_i32 = arith.constant 0 : i32
    %c0_i32_0 = arith.constant 0 : i32
    %c0_i32_1 = arith.constant 0 : i32
    return %c0_i32, %c0_i32_0 : i32, i32
  }
  func.func @transform_5(%arg0: i32) -> (i32, i32) {
    %c0_i32 = arith.constant 0 : i32
    %c0_i32_0 = arith.constant 0 : i32
    %c0_i32_1 = arith.constant 0 : i32
    return %c0_i32, %c0_i32_0 : i32, i32
  }
  func.func @transform_6(%arg0: i32) -> (i32, i32) {
    %c0_i32 = arith.constant 0 : i32
    %c0_i32_0 = arith.constant 0 : i32
    %c0_i32_1 = arith.constant 0 : i32
    return %c0_i32, %c0_i32_0 : i32, i32
  }
  func.func @transform_7(%arg0: i32) -> (i32, i32) {
    %c0_i32 = arith.constant 0 : i32
    %c0_i32_0 = arith.constant 0 : i32
    return %c0_i32, %arg0 : i32, i32
  }
}

</mosaic_0001>

<bundles_post_ra>
// kernel: tpu_custom_call.1
= control target key start
LH: loop header
LB: loop body
LE: loop exit
PB: predicated region body
PF: predicated region fallthrough
CT: control target
= control target key end

     0   :  { %s529_s0 = inlined_call_operand.vmem [shape: bf16[8,32], index: 0, kind: input, shape index: {}]   ;;  %s530_s1 = inlined_call_operand.hbm [shape: bf16[32,64], index: 1, kind: input, shape index: {}]   ;;  %s531_s2 = inlined_call_operand.vmem [shape: f32[1,64], index: 2, kind: input, shape index: {}]   ;;  %s532_s3 = inlined_call_operand.vmem [shape: bf16[64,64], index: 3, kind: input, shape index: {}]   ;;  %s533_s4 = inlined_call_operand.vmem [shape: f32[1,64], index: 4, kind: input, shape index: {}]   ;;  %s534_s5 = inlined_call_operand.vmem [shape: bf16[64,1], index: 5, kind: input, shape index: {}]   ;;  %s535_s6 = inlined_call_operand.<no memory space> [shape: f32[1,1], index: 6, kind: input, shape index: {}]   ;;  %s536_s7 = inlined_call_operand.hbm [shape: f32[1,8], index: 7, kind: output, shape index: {}]  }
   0x1   :  { %v12_v0 = vstv %s535_s6 }
   0x2   :  { %13 = vst [vmem:[#allocation2] sm:$0x1] %v12_v0 }
   0x3   :  { %14 = vsyncpa [#allocation4], 0 }
   0x4   :  { %15 = vsyncpa [#allocation5], 0  ;;  %s434_s26 = smov [#allocation3]  }
   0x5   :  { %s23_s27 = sshll.u32 %s434_s26, 4  ;;  %s24_s27 = int_to_ptr.vmem [resolvable:$true] %s23_s27 }
   0x6   :  { %s398_s28 = scalar_lea.vmem %s24_s27, 256  ;;  %p403_p1 = scmp.lt.s32.totalorder %s24_s27, %s24_s27 }
   0x7   :  { %p399_p0 = scmp.ne.s32.totalorder %s24_s27, %s398_s28  ;;  %p404_p2 = scmp.lt.s32.totalorder %s398_s28, %s398_s28 }
   0x9   :  { %p405_p3 = por %p404_p2, %p403_p1 }
   0xb   :  { %p406_p4 = pnand %p405_p3, %p399_p0 }
   0xd   :  { %409 = shalt.err (!%p406_p4)
}
   0xe   :  { %s435_s29 = smov 64   ;;  %s436_s30 = smov 4  }
   0xf   :  { %29 = dma.hbm_to_vmem [thread:$0]  %s530_s1, 256, %s24_s27, [#allocation4], %s435_s29, %s435_s29, %s436_s30  }
  0x10   :  { %430 = dma.done.wait [#allocation4], 256  }
  0x11   :  { %431 = vsyncadd [#allocation4], 4294967040  ;;  %v437_v1 = vmov 0.0   ;;  %vm438_vm0 = vmmov 0   ;;  %v380_v2 = vld [vmem:[#allocation3 + $0x8] sm:$0xff]   ;;  %v381_v3 = vld [vmem:[#allocation3] sm:$0xff]   ;;  %v213_v33 = vlaneseq }
  0x12   :  { %345 = vmatprep.subr.bf16.mxu0 %v437_v1  ;;  %349 = vmatprep.mubr.msk.bf16.mxu0 %vm438_vm0, %v437_v1  ;;  %v382_v4 = vld [vmem:[%s532_s3 + $0x18] sm:$0xff]   ;;  %v44_v5 = vld [vmem:[%s529_s0] sm:$0xf]  ;;  %vm68_vm1 = vcmask 261120   ;;  %v383_v6 = vld [vmem:[%s532_s3 + $0x10] sm:$0xff]   ;;  %vm153_vm2 = vcmask 523264  }
  0x13   :  { %353 = vmatprep.subr.bf16.mxu1 %v437_v1  ;;  %361 = vmatprep.mubr.msk.bf16.mxu1 %vm438_vm0, %v437_v1  ;;  %v384_v7 = vld [vmem:[%s532_s3 + $0x8] sm:$0xff]   ;;  %v385_v8 = vld [vmem:[%s532_s3] sm:$0xff]   ;;  %v388_v11 = vld [vmem:[%s534_s5 + $0x10] sm:$0xff]   ;;  %v439_v22 = vmov 0   ;;  %v214_v34 = vshrl.u32 %v213_v33, 7  ;;  %vm303_vm3 = vcmask 57344  }
  0x14   :  { %346 = vmatpush3.bf16.msra.mxu0 %v380_v2  ;;  %354 = vmatpush3.bf16.msra.mxu1 %v382_v4  ;;  %v386_v9 = vld [vmem:[%s534_s5] sm:$0xff]   ;;  %v387_v10 = vld [vmem:[%s534_s5 + $0x8] sm:$0xff]   ;;  %v389_v12 = vld [vmem:[%s534_s5 + $0x18] sm:$0xff]  }
  0x15   :  { %347 = vmatprep.subr.bf16.mxu0 %v437_v1  ;;  %355 = vmatprep.subr.bf16.mxu1 %v437_v1  ;;  %v320_v13 = vld [vmem:[%s531_s2] ss:$0 sm:$0xff]  ;;  %v215_v35 = vsub.s32 0, %v214_v34  ;;  %s440_s2 = smov [#allocation6]  }
  0x16   :  { %241 = vxpose.xlu0.c.b16.start [1/4] (short) (narrow) %v386_v9, 16  ;;  %v207_v21 = vld [vmem:[#allocation2] sm:$0x1]  ;;  %378 = vset.pattern.permute.xlu1 %v439_v22 }
  0x17   :  { %210 = vperm.xlu1 %378, %v207_v21   ;;  %v324_v23 = vld [vmem:[%s533_s4] ss:$0 sm:$0xff]  ;;  %s311_s4 = sshll.u32 %s440_s2, 4  ;;  %s312_s4 = int_to_ptr.vmem [resolvable:$true] %s311_s4 }
  0x18   :  { %348 = vmatpush3.bf16.msra.mxu0 %v381_v3  ;;  %356 = vmatpush3.bf16.msra.mxu1 %v383_v6  ;;  %s410_s27 = scalar_lea.vmem %s312_s4, 16  ;;  %s414_s28 = scalar_lea.vmem %s312_s4, 32 }
  0x19   :  { %365 = vmatprep.subr.bf16.mxu0 %v437_v1  ;;  %357 = vmatprep.subr.bf16.mxu1 %v437_v1  ;;  %p411_p5 = scmp.ne.s32.totalorder %s312_s4, %s410_s27  ;;  %p415_p6 = scmp.lt.s32.totalorder %s312_s4, %s312_s4 }
  0x1a   :  { %242 = vxpose.xlu0.c.b16.cont [2/4] (short) (narrow) %v387_v10, 16  ;;  %p416_p7 = scmp.lt.s32.totalorder %s414_s28, %s410_s27 }
  0x1b   :  { %350 = vmatmul.mubr.msk.bf16.vlgmr.msra.gmra.mxu0 %vm68_vm1, %v44_v5 }
  0x1c   :  { %367 = vmatprep.mubr.msk.bf16.mxu0 %vm438_vm0, %v437_v1  ;;  %358 = vmatpush3.bf16.msra.mxu1 %v384_v7  ;;  %p417_p8 = por %p416_p7, %p415_p6 }
  0x1d   :  { %359 = vmatprep.subr.bf16.mxu1 %v437_v1 }
  0x1e   :  { %243 = vxpose.xlu0.c.b16.cont [3/4] (short) (narrow) %v388_v11, 16  ;;  %p418_p9 = pnand %p417_p8, %p411_p5 }
  0x20   :  { %360 = vmatpush3.bf16.msra.mxu1 %v385_v8 }
  0x22   :  { %244 = vxpose.xlu0.c.b16.end [4/4] (short) (narrow) %v389_v12, 16 }
  0x2b   :  { %379 = vset.pattern.permute.xlu0 %v439_v22 }
  0x78   :  { %v249_v32 = vpop.trf.xlu0 }
  0x92   :  { %v211_v36 = vpop.permute.xlu1 %210 }
  0x93   :  { %v216_v37 = vrot.slane %v211_v36, %v215_v35 }
  0xdb   :  { %v106_v14 = vpop.f32.mrf.mxu0 }
  0xdc   :  { %v107_v15 = vadd.f32 %v320_v13, %v106_v14 }
  0xdd   :  { %v351_v16 = vpop.f32.mrf.mxu0 }
  0xde   :  { %v112_v17 = vmax.f32 %v107_v15, 0.0 }
  0xdf   :  { %v109_v18 = vpop.f32.mrf.mxu0 }
  0xe0   :  { %v113_v19 = vpack.c.bf16 %v112_v17, %v112_v17 }
  0xe1   :  { %v352_v20 = vpop.f32.mrf.mxu0 }
  0xe2   :  { %362 = vmatmul.mubr.msk.bf16.vlgmr.msra.gmra.mxu1 %vm153_vm2, %v113_v19 }
 0x1a2   :  { %v191_v24 = vpop.f32.mrf.mxu1 }
 0x1a3   :  { %v192_v25 = vadd.f32 %v324_v23, %v191_v24 }
 0x1a4   :  { %v363_v26 = vpop.f32.mrf.mxu1 }
 0x1a5   :  { %v197_v27 = vmax.f32 %v192_v25, 0.0 }
 0x1a6   :  { %v194_v28 = vpop.f32.mrf.mxu1 }
 0x1a7   :  { %v198_v29 = vpack.c.bf16 %v197_v27, %v197_v27 }
 0x1a8   :  { %v364_v30 = vpop.f32.mrf.mxu1 }
 0x1a9   :  { %v261_v31 = vsel %vm153_vm2, %v198_v29, 0 }
 0x1aa   :  { %366 = vmatpush3.bf16.xpose.msra.mxu0 %v261_v31 }
 0x1b1   :  { %368 = vmatmul.mubr.msk.bf16.vlgmr.msra.gmra.mxu0 %vm153_vm2, %v249_v32 }
 0x271   :  { %v297_v38 = vpop.f32.mrf.mxu0 }
 0x272   :  { %v298_v39 = vadd.f32 %v297_v38, %v216_v37 }
 0x273   :  { %v369_v40 = vpop.f32.mrf.mxu0 }
 0x274   :  { %304 = vst.msk [vmem:[#allocation6] sm:$0x1] %vm303_vm3, %v298_v39 }
 0x275   :  { %v300_v41 = vpop.f32.mrf.mxu0 }
 0x276   :  { %421 = shalt.err (!%p418_p9)
}
 0x277   :  { %314 = dma.vmem_to_hbm [thread:$0]  %s312_s4, 16, %s536_s7, [#allocation5]   ;;  %v370_v42 = vpop.f32.mrf.mxu0 }
 0x278   :  { %432 = dma.done.wait [#allocation5], 16  }
 0x279   :  { %433 = vsyncadd [#allocation5], 4294967280 }
 0x27a   :  { %318 = vsyncpa [#allocation4], 1 }
 0x27b   :  { %319 = vsyncpa [#allocation5], 1 }

</bundles_post_ra>
